<compile_context>
chip_gen: v6e
topology: v6e:2x2x1
jax: 0.10.0
libtpu: 0.0.40
codegen_flags: <defaults>
</compile_context>

<pallas_src>
import functools

import jax
import jax.numpy as jnp
from jax import lax
from jax.experimental import pallas as pl
from jax.experimental.pallas import tpu as pltpu


def _shift_lanes(a, d, idx, bound):
    """shifted[..., i] = a[..., i + d] where (idx + d) stays in [0, bound), else 0.

    `a` is 2D (channels, lanes); the shift is along the last (lane) axis.
    Uses an XLU lane rotation + VPU select instead of pad/concat relayouts.
    """
    n = a.shape[-1]
    if d == 0:
        return a
    rolled = pltpu.roll(a, shift=(-d) % n, axis=a.ndim - 1)
    valid = (idx + d >= 0) & (idx + d < bound)
    return jnp.where(valid, rolled, jnp.zeros_like(rolled))


def _eff_conv_kernel(x_ref, w1_ref, b1_ref, wh_ref, bh_ref,
                     wv_ref, bv_ref, w2_ref, b2_ref, o_ref, *, ksize, width):
    p = ksize // 2
    x = x_ref[0].astype(jnp.float32)                      # (C, H*W)  lane-dense
    hw = x.shape[-1]

    # ---- 1x1 conv (C -> Cm) + bias + ReLU  (MXU) ----
    y = jnp.dot(w1_ref[...], x, preferred_element_type=jnp.float32)
    y = jnp.maximum(y + b1_ref[...], 0.0)                 # (Cm, H*W)

    lane = lax.broadcasted_iota(jnp.int32, y.shape, 1)    # flat spatial index
    col = lane % width                                    # column within a row

    # ---- depthwise (1, k) conv along W: lane shifts of +-1.., per-row mask ----
    acc = jnp.zeros_like(y)
    for dw in range(ksize):                               # static unroll, k is small
        acc = acc + wh_ref[dw] * _shift_lanes(y, dw - p, col, width)
    acc = acc + bh_ref[...]

    # ---- depthwise (k, 1) conv along H: lane shifts of +-W, global mask ----
    acc2 = jnp.zeros_like(acc)
    for dh in range(ksize):
        acc2 = acc2 + wv_ref[dh] * _shift_lanes(acc, (dh - p) * width, lane, hw)
    y = jnp.maximum(acc2 + bv_ref[...], 0.0)              # (Cm, H*W)

    # ---- 1x1 conv (Cm -> C) + bias + residual  (MXU) ----
    out = jnp.dot(w2_ref[...], y, preferred_element_type=jnp.float32)
    out = out + b2_ref[...] + x
    o_ref[0] = out.astype(o_ref.dtype)


def eff_conv(x, params, kernel_size):
    """Forward pass of eff_conv.  x: (B, C, H, W), params use PyTorch layouts."""
    if kernel_size % 2 == 0:                              # mirrors the module
        kernel_size -= 1
    k = kernel_size
    B, C, H, W = x.shape
    Cm = params["w1"].shape[0]
    HW = H * W

    # --- layout plumbing (outside the kernel): lane-dense slabs, 2D weights ---
    xf = x.reshape(B, C, HW)
    w1m = params["w1"].reshape(Cm, C)
    b1m = params["b1"].reshape(Cm, 1)
    whm = jnp.transpose(params["wh"].reshape(Cm, k), (1, 0)).reshape(k, Cm, 1)
    bhm = params["bh"].reshape(Cm, 1)
    wvm = jnp.transpose(params["wv"].reshape(Cm, k), (1, 0)).reshape(k, Cm, 1)
    bvm = params["bv"].reshape(Cm, 1)
    w2m = params["w2"].reshape(C, Cm)
    b2m = params["b2"].reshape(C, 1)

    kernel = functools.partial(_eff_conv_kernel, ksize=k, width=W)

    def const_spec(shape):
        return pl.BlockSpec(shape, lambda b, _n=len(shape): (0,) * _n)

    out = pl.pallas_call(
        kernel,
        out_shape=jax.ShapeDtypeStruct((B, C, HW), x.dtype),
        grid_spec=pltpu.PrefetchScalarGridSpec(
            num_scalar_prefetch=0,
            grid=(B,),
            in_specs=[
                pl.BlockSpec((1, C, HW), lambda b: (b, 0, 0)),
                const_spec((Cm, C)),
                const_spec((Cm, 1)),
                const_spec((k, Cm, 1)),
                const_spec((Cm, 1)),
                const_spec((k, Cm, 1)),
                const_spec((Cm, 1)),
                const_spec((C, Cm)),
                const_spec((C, 1)),
            ],
            out_specs=pl.BlockSpec((1, C, HW), lambda b: (b, 0, 0)),
        ),
        compiler_params=pltpu.CompilerParams(
            dimension_semantics=("parallel",),
        ),
    )(xf, w1m, b1m, whm, bhm, wvm, bvm, w2m, b2m)
    return out.reshape(B, C, H, W)


def eff_conv_ref(x, params, kernel_size):
    """Pure-JAX reference matching the PyTorch module semantics."""
    if kernel_size % 2 == 0:
        kernel_size -= 1
    k = kernel_size
    p = k // 2
    dn = ("NCHW", "OIHW", "NCHW")
    Cm = params["w1"].shape[0]
    hi = lax.Precision.HIGHEST

    y = lax.conv_general_dilated(x, params["w1"], (1, 1), "VALID",
                                 dimension_numbers=dn, precision=hi)
    y = jax.nn.relu(y + params["b1"][None, :, None, None])
    y = lax.conv_general_dilated(y, params["wh"], (1, 1), ((0, 0), (p, p)),
                                 dimension_numbers=dn, feature_group_count=Cm,
                                 precision=hi)
    y = y + params["bh"][None, :, None, None]
    y = lax.conv_general_dilated(y, params["wv"], (1, 1), ((p, p), (0, 0)),
                                 dimension_numbers=dn, feature_group_count=Cm,
                                 precision=hi)
    y = jax.nn.relu(y + params["bv"][None, :, None, None])
    y = lax.conv_general_dilated(y, params["w2"], (1, 1), "VALID",
                                 dimension_numbers=dn, precision=hi)
    y = y + params["b2"][None, :, None, None]
    return y + x


if __name__ == "__main__":
    B, C, H, W = 2, 4, 16, 16
    ksize, r = 3, 2
    Cm = C // r

    key = jax.random.PRNGKey(0)
    ks = jax.random.split(key, 9)
    x = jax.random.normal(ks[0], (B, C, H, W), dtype=jnp.float32)
    params = {
        "w1": jax.random.normal(ks[1], (Cm, C, 1, 1), jnp.float32) * 0.5,
        "b1": jax.random.normal(ks[2], (Cm,), jnp.float32) * 0.1,
        "wh": jax.random.normal(ks[3], (Cm, 1, 1, ksize), jnp.float32) * 0.5,
        "bh": jax.random.normal(ks[4], (Cm,), jnp.float32) * 0.1,
        "wv": jax.random.normal(ks[5], (Cm, 1, ksize, 1), jnp.float32) * 0.5,
        "bv": jax.random.normal(ks[6], (Cm,), jnp.float32) * 0.1,
        "w2": jax.random.normal(ks[7], (C, Cm, 1, 1), jnp.float32) * 0.5,
        "b2": jax.random.normal(ks[8], (C,), jnp.float32) * 0.1,
    }

    out = eff_conv(x, params, ksize)
    out = jax.block_until_ready(out)

    ref = eff_conv_ref(x, params, ksize)
    assert out.shape == ref.shape, (out.shape, ref.shape)
    max_err = float(jnp.max(jnp.abs(out - ref)))
    assert jnp.allclose(out, ref, atol=1e-3, rtol=1e-3), f"max |err| = {max_err}"

    print("KERNEL_OK")
</pallas_src>

<mosaic_0001>
module attributes {stable_mosaic.version = 11 : i64} {
  func.func @_eff_conv_kernel(%arg0: i32, %arg1: memref<1x4x256xf32, #tpu.memory_space<vmem>>, %arg2: memref<2x4xf32, #tpu.memory_space<vmem>>, %arg3: memref<2x1xf32, #tpu.memory_space<vmem>>, %arg4: memref<3x2x1xf32, #tpu.memory_space<vmem>>, %arg5: memref<2x1xf32, #tpu.memory_space<vmem>>, %arg6: memref<3x2x1xf32, #tpu.memory_space<vmem>>, %arg7: memref<2x1xf32, #tpu.memory_space<vmem>>, %arg8: memref<4x2xf32, #tpu.memory_space<vmem>>, %arg9: memref<4x1xf32, #tpu.memory_space<vmem>>, %arg10: memref<1x4x256xf32, #tpu.memory_space<vmem>>) attributes {dimension_semantics = [#tpu.dimension_semantics<parallel>], iteration_bounds = array<i64: 2>, scalar_prefetch = 0 : i64, scratch_operands = 0 : i64, tpu.core_type = #tpu.core_type<tc>, window_params = [{transform_indices = @transform_0, window_bounds = array<i64: 1, 4, 256>}, {pipeline_mode = #tpu.pipeline_mode<synchronous>, transform_indices = @transform_1, window_bounds = array<i64: 2, 4>}, {pipeline_mode = #tpu.pipeline_mode<synchronous>, transform_indices = @transform_2, window_bounds = array<i64: 2, 1>}, {pipeline_mode = #tpu.pipeline_mode<synchronous>, transform_indices = @transform_3, window_bounds = array<i64: 3, 2, 1>}, {pipeline_mode = #tpu.pipeline_mode<synchronous>, transform_indices = @transform_4, window_bounds = array<i64: 2, 1>}, {pipeline_mode = #tpu.pipeline_mode<synchronous>, transform_indices = @transform_5, window_bounds = array<i64: 3, 2, 1>}, {pipeline_mode = #tpu.pipeline_mode<synchronous>, transform_indices = @transform_6, window_bounds = array<i64: 2, 1>}, {pipeline_mode = #tpu.pipeline_mode<synchronous>, transform_indices = @transform_7, window_bounds = array<i64: 4, 2>}, {pipeline_mode = #tpu.pipeline_mode<synchronous>, transform_indices = @transform_8, window_bounds = array<i64: 4, 1>}, {transform_indices = @transform_9, window_bounds = array<i64: 1, 4, 256>}]} {
    %c0 = arith.constant 0 : index
    %c0_0 = arith.constant 0 : index
    %c0_1 = arith.constant 0 : index
    %0 = vector.load %arg1[%c0, %c0_0, %c0_1] : memref<1x4x256xf32, #tpu.memory_space<vmem>>, vector<1x4x256xf32>
    %1 = vector.shape_cast %0 : vector<1x4x256xf32> to vector<4x256xf32>
    %c0_2 = arith.constant 0 : index
    %c0_3 = arith.constant 0 : index
    %2 = vector.load %arg2[%c0_2, %c0_3] : memref<2x4xf32, #tpu.memory_space<vmem>>, vector<2x4xf32>
    %cst = arith.constant dense<0.000000e+00> : vector<2x256xf32>
    %3 = tpu.matmul %2, %1, %cst {dimension_numbers = #tpu.dot_dimension_numbers<[1], [0], [0], [1], [0, 0, 1, 1], [], []>} : vector<2x4xf32>, vector<4x256xf32>, vector<2x256xf32> -> vector<2x256xf32>
    %c0_4 = arith.constant 0 : index
    %c0_5 = arith.constant 0 : index
    %4 = vector.load %arg3[%c0_4, %c0_5] : memref<2x1xf32, #tpu.memory_space<vmem>>, vector<2x1xf32>
    %5 = vector.broadcast %4 : vector<2x1xf32> to vector<2x256xf32>
    %6 = arith.addf %3, %5 : vector<2x256xf32>
    %cst_6 = arith.constant 0.000000e+00 : f32
    %7 = vector.broadcast %cst_6 : f32 to vector<2x256xf32>
    %8 = arith.maximumf %6, %7 : vector<2x256xf32>
    %9 = tpu.iota {dimensions = array<i32: 1>} : vector<2x256xi32>
    %c16_i32 = arith.constant 16 : i32
    %c0_i32 = arith.constant 0 : i32
    %10 = arith.cmpi eq, %c16_i32, %c0_i32 : i32
    %c1_i32 = arith.constant 1 : i32
    %11 = arith.select %10, %c1_i32, %c16_i32 : i32
    %12 = vector.broadcast %11 : i32 to vector<2x256xi32>
    %13 = arith.remsi %9, %12 : vector<2x256xi32>
    %c0_i32_7 = arith.constant 0 : i32
    %14 = vector.broadcast %c0_i32_7 : i32 to vector<2x256xi32>
    %15 = arith.cmpi ne, %13, %14 : vector<2x256xi32>
    %c0_i32_8 = arith.constant 0 : i32
    %16 = vector.broadcast %c0_i32_8 : i32 to vector<2x256xi32>
    %17 = arith.cmpi slt, %13, %16 : vector<2x256xi32>
    %c0_i32_9 = arith.constant 0 : i32
    %18 = arith.cmpi slt, %11, %c0_i32_9 : i32
    %19 = vector.broadcast %18 : i1 to vector<2x256xi1>
    %20 = vector.broadcast %19 : vector<2x256xi1> to vector<2x256xi1>
    %21 = arith.xori %17, %20 : vector<2x256xi1>
    %22 = arith.andi %21, %15 : vector<2x256xi1>
    %23 = vector.broadcast %11 : i32 to vector<2x256xi32>
    %24 = arith.addi %13, %23 : vector<2x256xi32>
    %25 = arith.select %22, %24, %13 : vector<2x256xi1>, vector<2x256xi32>
    %cst_10 = arith.constant 0.000000e+00 : f32
    %26 = vector.broadcast %cst_10 : f32 to vector<2x256xf32>
    %c0_11 = arith.constant 0 : index
    %c0_12 = arith.constant 0 : index
    %c0_13 = arith.constant 0 : index
    %27 = vector.load %arg4[%c0_11, %c0_12, %c0_13] : memref<3x2x1xf32, #tpu.memory_space<vmem>>, vector<1x2x1xf32>
    %28 = vector.shape_cast %27 : vector<1x2x1xf32> to vector<2x1xf32>
    %c1_i32_14 = arith.constant 1 : i32
    %29 = tpu.dynamic_rotate %8 by %c1_i32_14 dim 1 : vector<2x256xf32>, i32 -> vector<2x256xf32>
    %c-1_i32 = arith.constant -1 : i32
    %30 = vector.broadcast %c-1_i32 : i32 to vector<2x256xi32>
    %31 = arith.addi %25, %30 : vector<2x256xi32>
    %c0_i32_15 = arith.constant 0 : i32
    %32 = vector.broadcast %c0_i32_15 : i32 to vector<2x256xi32>
    %33 = arith.cmpi sge, %31, %32 : vector<2x256xi32>
    %c-1_i32_16 = arith.constant -1 : i32
    %34 = vector.broadcast %c-1_i32_16 : i32 to vector<2x256xi32>
    %35 = arith.addi %25, %34 : vector<2x256xi32>
    %c16_i32_17 = arith.constant 16 : i32
    %36 = vector.broadcast %c16_i32_17 : i32 to vector<2x256xi32>
    %37 = arith.cmpi slt, %35, %36 : vector<2x256xi32>
    %38 = arith.andi %33, %37 : vector<2x256xi1>
    %cst_18 = arith.constant 0.000000e+00 : f32
    %39 = vector.broadcast %cst_18 : f32 to vector<2x256xf32>
    %40 = arith.select %38, %29, %39 : vector<2x256xi1>, vector<2x256xf32>
    %41 = vector.broadcast %28 : vector<2x1xf32> to vector<2x256xf32>
    %42 = arith.mulf %41, %40 : vector<2x256xf32>
    %43 = arith.addf %26, %42 : vector<2x256xf32>
    %c1 = arith.constant 1 : index
    %c0_19 = arith.constant 0 : index
    %c0_20 = arith.constant 0 : index
    %44 = vector.load %arg4[%c1, %c0_19, %c0_20] : memref<3x2x1xf32, #tpu.memory_space<vmem>>, vector<1x2x1xf32>
    %45 = vector.shape_cast %44 : vector<1x2x1xf32> to vector<2x1xf32>
    %46 = vector.broadcast %45 : vector<2x1xf32> to vector<2x256xf32>
    %47 = arith.mulf %46, %8 : vector<2x256xf32>
    %48 = arith.addf %43, %47 : vector<2x256xf32>
    %c2 = arith.constant 2 : index
    %c0_21 = arith.constant 0 : index
    %c0_22 = arith.constant 0 : index
    %49 = vector.load %arg4[%c2, %c0_21, %c0_22] : memref<3x2x1xf32, #tpu.memory_space<vmem>>, vector<1x2x1xf32>
    %50 = vector.shape_cast %49 : vector<1x2x1xf32> to vector<2x1xf32>
    %c255_i32 = arith.constant 255 : i32
    %51 = tpu.dynamic_rotate %8 by %c255_i32 dim 1 : vector<2x256xf32>, i32 -> vector<2x256xf32>
    %c1_i32_23 = arith.constant 1 : i32
    %52 = vector.broadcast %c1_i32_23 : i32 to vector<2x256xi32>
    %53 = arith.addi %25, %52 : vector<2x256xi32>
    %c0_i32_24 = arith.constant 0 : i32
    %54 = vector.broadcast %c0_i32_24 : i32 to vector<2x256xi32>
    %55 = arith.cmpi sge, %53, %54 : vector<2x256xi32>
    %c1_i32_25 = arith.constant 1 : i32
    %56 = vector.broadcast %c1_i32_25 : i32 to vector<2x256xi32>
    %57 = arith.addi %25, %56 : vector<2x256xi32>
    %c16_i32_26 = arith.constant 16 : i32
    %58 = vector.broadcast %c16_i32_26 : i32 to vector<2x256xi32>
    %59 = arith.cmpi slt, %57, %58 : vector<2x256xi32>
    %60 = arith.andi %55, %59 : vector<2x256xi1>
    %cst_27 = arith.constant 0.000000e+00 : f32
    %61 = vector.broadcast %cst_27 : f32 to vector<2x256xf32>
    %62 = arith.select %60, %51, %61 : vector<2x256xi1>, vector<2x256xf32>
    %63 = vector.broadcast %50 : vector<2x1xf32> to vector<2x256xf32>
    %64 = arith.mulf %63, %62 : vector<2x256xf32>
    %65 = arith.addf %48, %64 : vector<2x256xf32>
    %c0_28 = arith.constant 0 : index
    %c0_29 = arith.constant 0 : index
    %66 = vector.load %arg5[%c0_28, %c0_29] : memref<2x1xf32, #tpu.memory_space<vmem>>, vector<2x1xf32>
    %67 = vector.broadcast %66 : vector<2x1xf32> to vector<2x256xf32>
    %68 = arith.addf %65, %67 : vector<2x256xf32>
    %cst_30 = arith.constant 0.000000e+00 : f32
    %69 = vector.broadcast %cst_30 : f32 to vector<2x256xf32>
    %c0_31 = arith.constant 0 : index
    %c0_32 = arith.constant 0 : index
    %c0_33 = arith.constant 0 : index
    %70 = vector.load %arg6[%c0_31, %c0_32, %c0_33] : memref<3x2x1xf32, #tpu.memory_space<vmem>>, vector<1x2x1xf32>
    %71 = vector.shape_cast %70 : vector<1x2x1xf32> to vector<2x1xf32>
    %c16_i32_34 = arith.constant 16 : i32
    %72 = tpu.dynamic_rotate %68 by %c16_i32_34 dim 1 : vector<2x256xf32>, i32 -> vector<2x256xf32>
    %c-16_i32 = arith.constant -16 : i32
    %73 = vector.broadcast %c-16_i32 : i32 to vector<2x256xi32>
    %74 = arith.addi %9, %73 : vector<2x256xi32>
    %c0_i32_35 = arith.constant 0 : i32
    %75 = vector.broadcast %c0_i32_35 : i32 to vector<2x256xi32>
    %76 = arith.cmpi sge, %74, %75 : vector<2x256xi32>
    %c-16_i32_36 = arith.constant -16 : i32
    %77 = vector.broadcast %c-16_i32_36 : i32 to vector<2x256xi32>
    %78 = arith.addi %9, %77 : vector<2x256xi32>
    %c256_i32 = arith.constant 256 : i32
    %79 = vector.broadcast %c256_i32 : i32 to vector<2x256xi32>
    %80 = arith.cmpi slt, %78, %79 : vector<2x256xi32>
    %81 = arith.andi %76, %80 : vector<2x256xi1>
    %cst_37 = arith.constant 0.000000e+00 : f32
    %82 = vector.broadcast %cst_37 : f32 to vector<2x256xf32>
    %83 = arith.select %81, %72, %82 : vector<2x256xi1>, vector<2x256xf32>
    %84 = vector.broadcast %71 : vector<2x1xf32> to vector<2x256xf32>
    %85 = arith.mulf %84, %83 : vector<2x256xf32>
    %86 = arith.addf %69, %85 : vector<2x256xf32>
    %c1_38 = arith.constant 1 : index
    %c0_39 = arith.constant 0 : index
    %c0_40 = arith.constant 0 : index
    %87 = vector.load %arg6[%c1_38, %c0_39, %c0_40] : memref<3x2x1xf32, #tpu.memory_space<vmem>>, vector<1x2x1xf32>
    %88 = vector.shape_cast %87 : vector<1x2x1xf32> to vector<2x1xf32>
    %89 = vector.broadcast %88 : vector<2x1xf32> to vector<2x256xf32>
    %90 = arith.mulf %89, %68 : vector<2x256xf32>
    %91 = arith.addf %86, %90 : vector<2x256xf32>
    %c2_41 = arith.constant 2 : index
    %c0_42 = arith.constant 0 : index
    %c0_43 = arith.constant 0 : index
    %92 = vector.load %arg6[%c2_41, %c0_42, %c0_43] : memref<3x2x1xf32, #tpu.memory_space<vmem>>, vector<1x2x1xf32>
    %93 = vector.shape_cast %92 : vector<1x2x1xf32> to vector<2x1xf32>
    %c240_i32 = arith.constant 240 : i32
    %94 = tpu.dynamic_rotate %68 by %c240_i32 dim 1 : vector<2x256xf32>, i32 -> vector<2x256xf32>
    %c16_i32_44 = arith.constant 16 : i32
    %95 = vector.broadcast %c16_i32_44 : i32 to vector<2x256xi32>
    %96 = arith.addi %9, %95 : vector<2x256xi32>
    %c0_i32_45 = arith.constant 0 : i32
    %97 = vector.broadcast %c0_i32_45 : i32 to vector<2x256xi32>
    %98 = arith.cmpi sge, %96, %97 : vector<2x256xi32>
    %c16_i32_46 = arith.constant 16 : i32
    %99 = vector.broadcast %c16_i32_46 : i32 to vector<2x256xi32>
    %100 = arith.addi %9, %99 : vector<2x256xi32>
    %c256_i32_47 = arith.constant 256 : i32
    %101 = vector.broadcast %c256_i32_47 : i32 to vector<2x256xi32>
    %102 = arith.cmpi slt, %100, %101 : vector<2x256xi32>
    %103 = arith.andi %98, %102 : vector<2x256xi1>
    %cst_48 = arith.constant 0.000000e+00 : f32
    %104 = vector.broadcast %cst_48 : f32 to vector<2x256xf32>
    %105 = arith.select %103, %94, %104 : vector<2x256xi1>, vector<2x256xf32>
    %106 = vector.broadcast %93 : vector<2x1xf32> to vector<2x256xf32>
    %107 = arith.mulf %106, %105 : vector<2x256xf32>
    %108 = arith.addf %91, %107 : vector<2x256xf32>
    %c0_49 = arith.constant 0 : index
    %c0_50 = arith.constant 0 : index
    %109 = vector.load %arg7[%c0_49, %c0_50] : memref<2x1xf32, #tpu.memory_space<vmem>>, vector<2x1xf32>
    %110 = vector.broadcast %109 : vector<2x1xf32> to vector<2x256xf32>
    %111 = arith.addf %108, %110 : vector<2x256xf32>
    %cst_51 = arith.constant 0.000000e+00 : f32
    %112 = vector.broadcast %cst_51 : f32 to vector<2x256xf32>
    %113 = arith.maximumf %111, %112 : vector<2x256xf32>
    %c0_52 = arith.constant 0 : index
    %c0_53 = arith.constant 0 : index
    %114 = vector.load %arg8[%c0_52, %c0_53] : memref<4x2xf32, #tpu.memory_space<vmem>>, vector<4x2xf32>
    %cst_54 = arith.constant dense<0.000000e+00> : vector<4x256xf32>
    %115 = tpu.matmul %114, %113, %cst_54 {dimension_numbers = #tpu.dot_dimension_numbers<[1], [0], [0], [1], [0, 0, 1, 1], [], []>} : vector<4x2xf32>, vector<2x256xf32>, vector<4x256xf32> -> vector<4x256xf32>
    %c0_55 = arith.constant 0 : index
    %c0_56 = arith.constant 0 : index
    %116 = vector.load %arg9[%c0_55, %c0_56] : memref<4x1xf32, #tpu.memory_space<vmem>>, vector<4x1xf32>
    %117 = vector.broadcast %116 : vector<4x1xf32> to vector<4x256xf32>
    %118 = arith.addf %115, %117 : vector<4x256xf32>
    %119 = arith.addf %118, %1 : vector<4x256xf32>
    %c0_57 = arith.constant 0 : index
    %c0_58 = arith.constant 0 : index
    %c0_59 = arith.constant 0 : index
    %120 = vector.load %arg10[%c0_57, %c0_58, %c0_59] : memref<1x4x256xf32, #tpu.memory_space<vmem>>, vector<1x4x256xf32>
    %121 = vector.shape_cast %120 : vector<1x4x256xf32> to vector<4x256xf32>
    %122 = vector.shape_cast %119 : vector<4x256xf32> to vector<1x4x256xf32>
    tpu.vector_store %arg10[%c0_57, %c0_58, %c0_59], %122 {strides = array<i32>} : memref<1x4x256xf32, #tpu.memory_space<vmem>>, vector<1x4x256xf32>,
    return
  }
  func.func @transform_0(%arg0: i32) -> (i32, i32, i32) {
    %c0_i32 = arith.constant 0 : i32
    %c0_i32_0 = arith.constant 0 : i32
    %c0_i32_1 = arith.constant 0 : i32
    return %arg0, %c0_i32, %c0_i32_0 : i32, i32, i32
  }
  func.func @transform_1(%arg0: i32) -> (i32, i32) {
    %c0_i32 = arith.constant 0 : i32
    %c0_i32_0 = arith.constant 0 : i32
    %c0_i32_1 = arith.constant 0 : i32
    return %c0_i32, %c0_i32_0 : i32, i32
  }
  func.func @transform_2(%arg0: i32) -> (i32, i32) {
    %c0_i32 = arith.constant 0 : i32
    %c0_i32_0 = arith.constant 0 : i32
    %c0_i32_1 = arith.constant 0 : i32
    return %c0_i32, %c0_i32_0 : i32, i32
  }
  func.func @transform_3(%arg0: i32) -> (i32, i32, i32) {
    %c0_i32 = arith.constant 0 : i32
    %c0_i32_0 = arith.constant 0 : i32
    %c0_i32_1 = arith.constant 0 : i32
    %c0_i32_2 = arith.constant 0 : i32
    return %c0_i32, %c0_i32_0, %c0_i32_1 : i32, i32, i32
  }
  func.func @transform_4(%arg0: i32) -> (i32, i32) {
    %c0_i32 = arith.constant 0 : i32
    %c0_i32_0 = arith.constant 0 : i32
    %c0_i32_1 = arith.constant 0 : i32
    return %c0_i32, %c0_i32_0 : i32, i32
  }
  func.func @transform_5(%arg0: i32) -> (i32, i32, i32) {
    %c0_i32 = arith.constant 0 : i32
    %c0_i32_0 = arith.constant 0 : i32
    %c0_i32_1 = arith.constant 0 : i32
    %c0_i32_2 = arith.constant 0 : i32
    return %c0_i32, %c0_i32_0, %c0_i32_1 : i32, i32, i32
  }
  func.func @transform_6(%arg0: i32) -> (i32, i32) {
    %c0_i32 = arith.constant 0 : i32
    %c0_i32_0 = arith.constant 0 : i32
    %c0_i32_1 = arith.constant 0 : i32
    return %c0_i32, %c0_i32_0 : i32, i32
  }
  func.func @transform_7(%arg0: i32) -> (i32, i32) {
    %c0_i32 = arith.constant 0 : i32
    %c0_i32_0 = arith.constant 0 : i32
    %c0_i32_1 = arith.constant 0 : i32
    return %c0_i32, %c0_i32_0 : i32, i32
  }
  func.func @transform_8(%arg0: i32) -> (i32, i32) {
    %c0_i32 = arith.constant 0 : i32
    %c0_i32_0 = arith.constant 0 : i32
    %c0_i32_1 = arith.constant 0 : i32
    return %c0_i32, %c0_i32_0 : i32, i32
  }
  func.func @transform_9(%arg0: i32) -> (i32, i32, i32) {
    %c0_i32 = arith.constant 0 : i32
    %c0_i32_0 = arith.constant 0 : i32
    %c0_i32_1 = arith.constant 0 : i32
    return %arg0, %c0_i32, %c0_i32_0 : i32, i32, i32
  }
}

</mosaic_0001>

<bundles_post_ra>
// kernel: tpu_custom_call.1
= control target key start
LH: loop header
LB: loop body
LE: loop exit
PB: predicated region body
PF: predicated region fallthrough
CT: control target
= control target key end

     0   :  { %14 = vsyncpa [#allocation3], 0  ;;  %s1104_s0 = inlined_call_operand.vmem [shape: f32[2,4,256], index: 0, kind: input, shape index: {}]   ;;  %s1105_s1 = inlined_call_operand.vmem [shape: f32[2,4], index: 1, kind: input, shape index: {}]   ;;  %s1106_s2 = inlined_call_operand.vmem [shape: f32[2,1], index: 2, kind: input, shape index: {}]   ;;  %s1107_s3 = inlined_call_operand.vmem [shape: f32[3,2,1], index: 3, kind: input, shape index: {}]   ;;  %s1108_s4 = inlined_call_operand.vmem [shape: f32[2,1], index: 4, kind: input, shape index: {}]   ;;  %s1109_s5 = inlined_call_operand.vmem [shape: f32[3,2,1], index: 5, kind: input, shape index: {}]   ;;  %s1110_s6 = inlined_call_operand.vmem [shape: f32[2,1], index: 6, kind: input, shape index: {}]   ;;  %s1111_s7 = inlined_call_operand.vmem [shape: f32[4,2], index: 7, kind: input, shape index: {}]   ;;  %s1112_s8 = inlined_call_operand.vmem [shape: f32[4,1], index: 8, kind: input, shape index: {}]   ;;  %s1113_s9 = inlined_call_operand.hbm [shape: f32[2,4,256], index: 9, kind: output, shape index: {}]  }
   0x1   :  { %16 = vsyncpa [#allocation3 + $0x1], 0  ;;  %s962_s30 = smov 0   ;;  %s964_s10 = smov 0  }
   0x2   :  { %s966_s11 = smov 0   ;;  %s968_s12 = smov 0  }
   0x3 LB: > { %s983_s13 = sadd.s32 4294967295, %s903_s12   ;;  %s771_s14 = sadd.s32 4294967294, %s903_s12   ;;  %s903_s12 = sphi %s968_s12, %s1119_s12   ;;  %s899_s11 = sphi %s966_s11, %s1118_s11   ;;  %s895_s10 = sphi %s964_s10, %s1117_s10   ;;  %s891_s30 = sphi %s962_s30, %s1116_s30  }
   0x4   : > { %s987_s15 = sadd.s32 1, %s903_s12   ;;  %s223_s16 = sadd.s32 1, %s899_s11 }
   0x5   : > { %s220_s17 = ssub.s32 %s903_s12, %s987_s15  ;;  %p233_p0 = scmp.ne.s32.totalorder %s899_s11, %s895_s10 }
   0x6   : > { %p221_p1 = scmp.eq.s32.totalorder %s220_s17, 0  ;;  %p234_p2 = scmp.eq.s32.totalorder %s983_s13, 1 }
   0x7   : > { %p239_p3 = scmp.ne.s32.totalorder %s895_s10, %s891_s30  ;;  %p240_p4 = scmp.eq.s32.totalorder %s771_s14, 1 }
   0x8   : > { %s998_s18 = scalar_select %p221_p1, %s899_s11, %s223_s16  }
   0x9   : > { %p1000_p5 = por %p234_p2, %p233_p0  ;;  %p1004_p6 = por %p240_p4, %p239_p3 }
   0xa   : > { %p774_p7 = scmp.ge.s32.totalorder %s903_s12, 1  ;;  %p290_p8 = scmp.lt.s32.totalorder %s903_s12, 3 }
   0xc   : > { %p291_p9 = pnand %p774_p7, %p290_p8 }
   0xd   : > { %p326_p10 = scmp.lt.s32.totalorder (!%p291_p9), %s983_s13, 1  ;;  %s907_s24 = smov (!%p291_p9), 1  }
   0xe   : > { %294 = sbr.rel (%p291_p9) target bundleno = 712 (0x2c8), region = 56  ;;  %s908_s25 = smov (!%p291_p9), 127  }
   0xf   : > { %s909_s22 = smov (!%p291_p9), 16   ;;  %s323_s14 = sand.u32 (!%p291_p9), 1, %s895_s10  }
  0x10   : > { %s775_s16 = sshll.u32 (!%p291_p9), %s323_s14, 3  ;;  %s794_s17 = sshll.u32 (!%p291_p9), %s983_s13, 7 }
  0x13   : > { %v905_v0 = vmov 0.0   ;;  %v333_v1 = vld [vmem:[%s1106_s2] sm:$0x3]  ;;  %s327_s23 = scalar_select %p326_p10, %s983_s13, 1  ;;  %v906_v2 = vmov 0   ;;  %vm345_vm0 = vcmask 1043456   ;;  %v423_v20 = vlaneseq }
  0x14   : > { %414 = vmatprep.mubr.f32.mxu0 %v905_v0  ;;  %682 = vmatprep.mubr.f32.mxu1 %v905_v0  ;;  %v781_v3 = vld [vmem:[%s1107_s3 + $0x2] sm:$0x3]  ;;  %v450_v4 = vld [vmem:[%s1107_s3] sm:$0x3]  ;;  %v782_v5 = vld [vmem:[%s1107_s3 + $0x4] sm:$0x3] }
  0x15   : > { %840 = vset.pattern.permute.xlu0 %v906_v2  ;;  %841 = vset.pattern.permute.xlu1 %v906_v2  ;;  %s793_s26 = sshll.u32 %s327_s23, 3  ;;  %v332_v8 = vld [vmem:[%s1105_s1] sm:$0x3]  ;;  %vm341_vm1 = vcmask 31744   ;;  %v783_v18 = vld [vmem:[%s1109_s5 + $0x2] sm:$0x3] }
  0x16   : > { %336 = vperm.xlu0 %840, %v333_v1   ;;  %481 = vperm.xlu1 %841, %v781_v3   ;;  %s330_s21 = scalar_lea.vmem %s1104_s0, %s793_s26  ;;  %v516_v16 = vld [vmem:[%s1108_s4] sm:$0x3]  ;;  %v784_v19 = vld [vmem:[%s1109_s5 + $0x4] sm:$0x3]  ;;  %v1050_v21 = vand.u32 127, %v423_v20  ;;  %s910_s23 = smov 112  }
  0x17   : > { %v1027_v6 = vld [vmem:[%s330_s21] sm:$0xff]  ;;  %vm611_vm12 = vcmask 1041408   ;;  %vm607_vm13 = vcmask 15360   ;;  %s325_s21 = scalar_lea.vmem [#allocation2], %s775_s16  ;;  %s698_s26 = scalar_lea.sflag [#allocation3], %s323_s14 }
  0x18   : > { %v1031_v7 = vcombine.high %v1027_v6, %v1027_v6  ;;  %v524_v17 = vld [vmem:[%s1109_s5] sm:$0x3]  ;;  %v425_v23 = vadd.s32 128, %v1050_v21  ;;  %v430_v24 = vand.u32 15, %v1050_v21  ;;  %vm455_vm2 = vcmp.lt.s32.totalorder %v1050_v21, 1  ;;  %s911_s13 = smov [#allocation2]  }
  0x19   : > { %vm494_vm5 = vcmp.lt.s32.totalorder %v1050_v21, 127  ;;  %v601_v57 = vld [vmem:[%s1112_s8] sm:$0xf]  ;;  %v532_v62 = vadd.s32 4294967280, %v1050_v21  ;;  %vm529_vm8 = vcmp.lt.s32.totalorder %v1050_v21, 16  ;;  %vm568_vm10 = vcmp.lt.s32.totalorder %v1050_v21, 112 }
  0x1a   : > { %470 = vperm.xlu0 %840, %v450_v4   ;;  %509 = vperm.xlu1 %841, %v782_v5   ;;  %v437_v27 = vand.u32 15, %v425_v23  ;;  %v458_v28 = vadd.s32 4294967295, %v430_v24  ;;  %v497_v32 = vadd.s32 1, %v430_v24  ;;  %v590_v58 = vld [vmem:[%s1110_s6] sm:$0x3]  ;;  %v572_v2 = vadd.s32 16, %v425_v23 }
  0x1b   : > { %778 = vmatprep.subr.msk.mxu0 %vm345_vm0, %v1031_v7  ;;  %vm534_vm9 = vcmp.ge.s32.totalorder %v532_v62, 0  ;;  %s847_s28 = sshll.u32 %s911_s13, 4  ;;  %s848_s28 = int_to_ptr.vmem [resolvable:$false] %s847_s28 }
  0x1c   : > { %779 = vmatpush1.msk.msra.mxu0 %vm345_vm0, %v1027_v6  ;;  %v459_v30 = vadd.s32 4294967295, %v437_v27  ;;  %v498_v33 = vadd.s32 1, %v437_v27  ;;  %vm460_vm3 = vcmp.ge.s32.totalorder %v458_v28, 0  ;;  %vm501_vm6 = vcmp.lt.s32.totalorder %v497_v32, 16  ;;  %v600_v27 = vld [vmem:[%s1111_s7] sm:$0xf] }
  0x1d   : > { %780 = vmatmul.mubr.msk.f32.vlgmr.msra.gmra.mxu0 %vm341_vm1, %v332_v8  ;;  %vm576_vm11 = vcmp.lt.s32.totalorder %v572_v2, 256  ;;  %s849_s29 = scalar_lea.vmem %s848_s28, 256 }
  0x1e   : > { %vm461_vm4 = vcmp.ge.s32.totalorder %v459_v30, 0  ;;  %vm502_vm7 = vcmp.lt.s32.totalorder %v498_v33, 16 }
  0x91   : > { %v337_v9 = vpop.permute.xlu0 %336  ;;  %v482_v22 = vpop.permute.xlu1 %481 }
  0x95   : > { %v471_v25 = vpop.permute.xlu0 %470  ;;  %v510_v26 = vpop.permute.xlu1 %509 }
  0xdd   : > { %v416_v10 = vpop.f32.mrf.mxu0 }
  0xde   : > { %v417_v11 = vadd.f32 %v416_v10, %v337_v9 }
  0xdf   : > { %v418_v12 = vpop.f32.mrf.mxu0 }
  0xe0   : > { %v421_v13 = vmax.f32 %v417_v11, 0.0  ;;  %v419_v14 = vadd.f32 %v418_v12, %v337_v9 }
  0xe2   : > { %v422_v15 = vmax.f32 %v419_v14, 0.0  ;;  %451 = vrot.lane.b32.xlu0 %v421_v13, %s907_s24  ;;  %v484_v46 = vmul.f32 %v482_v22, %v421_v13 }
  0xe4   : > { %453 = vrot.lane.b32.xlu1 %v422_v15, %s907_s24  ;;  %v485_v47 = vmul.f32 %v482_v22, %v422_v15 }
  0xe6   : > { %490 = vrot.lane.b32.xlu0 %v421_v13, %s908_s25 }
  0xe8   : > { %492 = vrot.lane.b32.xlu1 %v422_v15, %s908_s25  ;;  %s710_s25 = scalar_lea.hbm %s1113_s9, %s794_s17 }
  0xea   : > { %519 = vperm.xlu0 %840, %v516_v16  }
  0xec   : > { %544 = vperm.xlu1 %841, %v524_v17  }
  0xee   : > { %555 = vperm.xlu0 %840, %v783_v18  }
  0xf0   : > { %583 = vperm.xlu1 %841, %v784_v19  }
 0x154   : > { %v452_v29 = vpop.permute.xlu0 %451 }
 0x156   : > { %v454_v31 = vpop.permute.xlu1 %453 }
 0x157   : > { %v456_v34 = vsel %vm455_vm2, %v452_v29, %v454_v31  ;;  %v457_v35 = vsel %vm455_vm2, %v454_v31, %v452_v29 }
 0x158   : > { %v491_v36 = vpop.permute.xlu0 %490  ;;  %v466_v38 = vsel %vm460_vm3, %v457_v35, 0.0  ;;  %v467_v39 = vsel %vm461_vm4, %v456_v34, 0.0 }
 0x159   : > { %v473_v44 = vmul.f32 %v471_v25, %v466_v38  ;;  %v474_v45 = vmul.f32 %v471_v25, %v467_v39 }
 0x15a   : > { %v493_v37 = vpop.permute.xlu1 %492 }
 0x15b   : > { %v495_v40 = vsel %vm494_vm5, %v491_v36, %v493_v37  ;;  %v496_v41 = vsel %vm494_vm5, %v493_v37, %v491_v36  ;;  %v487_v50 = vadd.f32 %v485_v47, %v474_v45  ;;  %v486_v51 = vadd.f32 %v484_v46, %v473_v44 }
 0x15c   : > { %v505_v42 = vsel %vm501_vm6, %v495_v40, 0.0  ;;  %v506_v43 = vsel %vm502_vm7, %v496_v41, 0.0 }
 0x15d   : > { %v512_v48 = vmul.f32 %v510_v26, %v505_v42  ;;  %v513_v49 = vmul.f32 %v510_v26, %v506_v43 }
 0x15f   : > { %v515_v52 = vadd.f32 %v513_v49, %v487_v50  ;;  %v514_v53 = vadd.f32 %v512_v48, %v486_v51 }
 0x165   : > { %v520_v54 = vpop.permute.xlu0 %519 }
 0x166   : > { %v522_v55 = vadd.f32 %v520_v54, %v514_v53  ;;  %v523_v56 = vadd.f32 %v520_v54, %v515_v52 }
 0x167   : > { %v545_v59 = vpop.permute.xlu1 %544 }
 0x168   : > { %527 = vrot.lane.b32.xlu1 %v523_v56, %s909_s22  ;;  %525 = vrot.lane.b32.xlu0 %v522_v55, %s909_s22  ;;  %s712_s22 = sshll.u32 %s325_s21, 4  ;;  %s713_s22 = int_to_ptr.vmem [resolvable:$true] %s712_s22 }
 0x169   : > { %v556_v60 = vpop.permute.xlu0 %555  ;;  %s843_s27 = scalar_lea.vmem %s713_s22, 128  ;;  %p850_p0 = scmp.lt.s32.totalorder %s713_s22, %s848_s28 }
 0x16a   : > { %v558_v13 = vmul.f32 %v556_v60, %v522_v55  ;;  %v559_v15 = vmul.f32 %v556_v60, %v523_v56  ;;  %p844_p11 = scmp.ne.s32.totalorder %s713_s22, %s843_s27  ;;  %p851_p1 = scmp.lt.s32.totalorder %s849_s29, %s843_s27 }
 0x16b   : > { %v584_v61 = vpop.permute.xlu1 %583 }
 0x16c   : > { %566 = vrot.lane.b32.xlu1 %v523_v56, %s910_s23  ;;  %564 = vrot.lane.b32.xlu0 %v522_v55, %s910_s23  ;;  %p845_p12 = pnand %p844_p11, %p1000_p5  ;;  %p852_p2 = por %p851_p1, %p850_p0 }
 0x16e   : > { %p846_p13 = pneg %p845_p12 }
 0x170   : > { %604 = vperm.xlu1 %841, %v601_v57   ;;  %593 = vperm.xlu0 %840, %v590_v58   ;;  %p853_p3 = pnand %p852_p2, %p846_p13 }
 0x1da   : > { %v528_v63 = vpop.permute.xlu1 %527  ;;  %v526_v0 = vpop.permute.xlu0 %525 }
 0x1db   : > { %v531_v1 = vsel %vm529_vm8, %v528_v63, %v526_v0  ;;  %v530_v9 = vsel %vm529_vm8, %v526_v0, %v528_v63 }
 0x1dc   : > { %v540_v5 = vsel %vm534_vm9, %v531_v1, 0.0  ;;  %v548_v14 = vmul.f32 %v545_v59, %v530_v9 }
 0x1dd   : > { %v547_v10 = vmul.f32 %v545_v59, %v540_v5 }
 0x1de   : > { %v567_v3 = vpop.permute.xlu1 %566  ;;  %v565_v4 = vpop.permute.xlu0 %564  ;;  %v561_v19 = vadd.f32 %v559_v15, %v548_v14 }
 0x1df   : > { %v570_v8 = vsel %vm568_vm10, %v567_v3, %v565_v4  ;;  %v569_v11 = vsel %vm568_vm10, %v565_v4, %v567_v3  ;;  %v560_v18 = vadd.f32 %v558_v13, %v547_v10 }
 0x1e0   : > { %v580_v12 = vsel %vm576_vm11, %v570_v8, 0.0  ;;  %v586_v16 = vmul.f32 %v584_v61, %v569_v11 }
 0x1e1   : > { %v587_v17 = vmul.f32 %v584_v61, %v580_v12 }
 0x1e2   : > { %v588_v22 = vadd.f32 %v586_v16, %v560_v18 }
 0x1e3   : > { %v589_v20 = vadd.f32 %v587_v17, %v561_v19 }
 0x1eb   : > { %v594_v21 = vpop.permute.xlu0 %593  ;;  %v605_v28 = vpop.permute.xlu1 %604 }
 0x1ec   : > { %v596_v23 = vadd.f32 %v594_v21, %v588_v22  ;;  %v597_v24 = vadd.f32 %v594_v21, %v589_v20 }
 0x1ee   : > { %v598_v25 = vmax.f32 %v596_v23, 0.0  ;;  %v599_v26 = vmax.f32 %v597_v24, 0.0 }
 0x1f0   : > { %785 = vmatprep.subr.msk.mxu1 %vm611_vm12, %v599_v26 }
 0x1f1   : > { %786 = vmatpush1.msk.msra.mxu1 %vm611_vm12, %v598_v25 }
 0x1f2   : > { %787 = vmatmul.mubr.msk.f32.vlgmr.msra.gmra.mxu1 %vm607_vm13, %v600_v27 }
 0x2b2   : > { %v684_v29 = vpop.f32.mrf.mxu1 }
 0x2b3   : > { %v685_v30 = vadd.f32 %v684_v29, %v605_v28 }
 0x2b4   : > { %v686_v31 = vpop.f32.mrf.mxu1 }
 0x2b5   : > { %v687_v32 = vadd.f32 %v686_v31, %v605_v28  ;;  %v690_v33 = vadd.f32 %v685_v30, %v1027_v6 }
 0x2b7   : > { %v691_v34 = vadd.f32 %v687_v32, %v1031_v7 }
 0x2b9   : > { %v694_v35 = vcombine.low %v690_v33, %v691_v34 }
 0x2bb   : > { %696 = vst [vmem:[%s325_s21] sm:$0xff] %v694_v35 }
 0x2bc   : > { %856 = shalt.err (!%p853_p3)
}
 0x2bd   : > { %s857_s16 = scalar_lea.hbm %s710_s25, 128  ;;  %s861_s21 = scalar_lea.hbm %s1113_s9, 256 }
 0x2be   : > { %p858_p4 = scmp.ne.s32.totalorder %s710_s25, %s857_s16  ;;  %p862_p9 = scmp.lt.s32.totalorder %s710_s25, %s1113_s9 }
 0x2bf   : > { %p863_p10 = scmp.lt.s32.totalorder %s861_s21, %s857_s16 }
 0x2c0   : > { %p859_p7 = pnand %p858_p4, %p1000_p5 }
 0x2c1   : > { %p864_p11 = por %p863_p10, %p862_p9 }
 0x2c2   : > { %p860_p8 = pneg %p859_p7 }
 0x2c4   : > { %p865_p12 = pnand %p864_p11, %p860_p8 }
 0x2c6   : > { %868 = shalt.err (!%p865_p12)
}
 0x2c7   : > { %795 = dma.vmem_to_hbm [thread:$0]  (%p1000_p5), %s713_s22, 128, %s710_s25, %s698_s26  }
 0x2c8 PF: > { %p801_p13 = scmp.ge.s32.totalorder %s903_s12, 2  ;;  %s724_s27 = sand.u32 1, %s891_s30  }
 0x2c9   : > { %s725_s13 = scalar_lea.sflag [#allocation3], %s724_s27 }
 0x2ca   : > { %p798_p0 = pnand %p801_p13, %p1004_p6 }
 0x2cc   : > { %p799_p1 = pneg %p798_p0 }
 0x2ce   : > { %886 = dma.done.wait (%p799_p1), %s725_s13, 128  }
 0x2cf   : > { %888 = vsyncadd (%p799_p1), %s725_s13, 4294967168  ;;  %p19_p2 = scmp.ge.s32.totalorder %s987_s15, 4   ;;  %s1116_s30 = smov %s895_s10 }
 0x2d0   : > { %s1117_s10 = smov %s899_s11  ;;  %s1118_s11 = smov %s998_s18 }
 0x2d1   : > { %s1119_s12 = smov %s987_s15  ;;  %21 = sbr.rel (!%p19_p2) target bundleno = 3 (0x3), region = 95 }
 0x2d6   :  { %730 = vsyncpa [#allocation3], 1 }
 0x2d7   :  { %732 = vsyncpa [#allocation3 + $0x1], 1 }

</bundles_post_ra>
